<compile_context>
chip_gen: v6e
topology: v6e:2x2x1
jax: 0.10.0
libtpu: 0.0.40
codegen_flags: <defaults>
</compile_context>

<pallas_src>
import functools

import jax
import jax.numpy as jnp
from jax.experimental import pallas as pl
from jax.experimental.pallas import tpu as pltpu


def _dice_kernel(x_ref, t_ref, w_ref, *rest, bn, td, d_total, n_total,
                 normalize, needs_mask):
    """One grid step over a (bn, td) tile.

    Refs (in order): x, t, w, [wsum], out(per-row 1-dice), iw_acc, sw_acc.
      x_ref, t_ref, w_ref : (bn, td) input tiles (original dtype)
      wsum_ref            : (1, td) column sums of w (only if normalize)
      o_ref               : (bn, 1) per-row loss, written on the last D step
      iw_acc, sw_acc      : (bn, td) f32 elementwise accumulators (VMEM)
    """
    if normalize:
        wsum_ref, o_ref, iw_acc, sw_acc = rest
    else:
        o_ref, iw_acc, sw_acc = rest

    k = pl.program_id(1)

    @pl.when(k == 0)
    def _():
        iw_acc[...] = jnp.zeros_like(iw_acc)
        sw_acc[...] = jnp.zeros_like(sw_acc)

    # Cast on load in VMEM (v5e has no bf16 VPU); no-op for f32 inputs.
    x = x_ref[...].astype(jnp.float32)
    t = t_ref[...].astype(jnp.float32)
    w = w_ref[...].astype(jnp.float32)

    if normalize:
        wsum = wsum_ref[...].astype(jnp.float32)          # (1, td)
        w = w * (jnp.float32(n_total) / wsum)             # broadcast over rows

    iw_term = (x * t) * w                                 # intersection * w
    sw_term = (x + t) * w                                 # x*w + t*w (fused)

    if needs_mask:
        # Ragged tail of the last D block: Pallas clips the DMA, so the tail of
        # the VMEM tile holds garbage — select it away (safe even for NaN/Inf).
        col = jax.lax.broadcasted_iota(jnp.int32, (bn, td), 1) + k * td
        valid = col < d_total
        iw_term = jnp.where(valid, iw_term, 0.0)
        sw_term = jnp.where(valid, sw_term, 0.0)

    # Pure elementwise accumulation (VPU); no per-step cross-lane reduction.
    iw_acc[...] += iw_term
    sw_acc[...] += sw_term

    @pl.when(k == pl.num_programs(1) - 1)
    def _():
        smooth = jnp.float32(1.0)
        eps = jnp.float32(1e-5)
        iw = jnp.sum(iw_acc[...], axis=1, keepdims=True)  # single XLU reduce
        sw = jnp.sum(sw_acc[...], axis=1, keepdims=True)
        dice = (2.0 * iw + smooth) / (sw + smooth + eps)
        o_ref[...] = (1.0 - dice).astype(o_ref.dtype)


def binary_dice_loss_weighted(input_, targets, weights, *,
                              weights_normalize=False,
                              vmem_budget_bytes=30 * 1024 * 1024):
    """Matches BinaryDiceLoss_Weighted.forward. Returns a float32 scalar."""
    N = targets.shape[0]
    x = input_.reshape(N, -1)
    t = targets.reshape(N, -1)
    w = weights.reshape(N, -1)
    D = x.shape[1]

    # Row-block size: full N (valid since it equals the array dim) or 8 when N
    # is a multiple of 8, exposing a parallel axis for megacore / v7x 2 TCs.
    bn = 8 if (N >= 8 and N % 8 == 0) else N

    # Tile width from a VMEM budget: 3 inputs double-buffered + 2 f32 scratch
    # accumulators (+ the small wsum stream when normalizing).
    itemsizes = (jnp.dtype(x.dtype).itemsize + jnp.dtype(t.dtype).itemsize
                 + jnp.dtype(w.dtype).itemsize)
    bytes_per_col = bn * (2 * itemsizes + 2 * 4)
    if weights_normalize:
        bytes_per_col += 2 * 4
    td = max(128, (vmem_budget_bytes // bytes_per_col) // 128 * 128)
    d_ceil = ((D + 127) // 128) * 128
    td = min(td, d_ceil)

    grid = (N // bn, pl.cdiv(D, td))
    needs_mask = (D % td) != 0

    kernel = functools.partial(
        _dice_kernel, bn=bn, td=td, d_total=D, n_total=N,
        normalize=weights_normalize, needs_mask=needs_mask)

    row_spec = pl.BlockSpec((bn, td), lambda i, k: (i, k))
    in_specs = [row_spec, row_spec, row_spec]
    inputs = [x, t, w]
    if weights_normalize:
        # Only the (1, D) column-sum is materialized; normalized weights never
        # hit HBM (normalization fused into the kernel).
        wsum = jnp.sum(w.astype(jnp.float32), axis=0, keepdims=True)
        in_specs.append(pl.BlockSpec((1, td), lambda i, k: (0, k)))
        inputs.append(wsum)

    per_row = pl.pallas_call(
        kernel,
        out_shape=jax.ShapeDtypeStruct((N, 1), jnp.float32),
        grid_spec=pltpu.PrefetchScalarGridSpec(
            num_scalar_prefetch=0,
            grid=grid,
            in_specs=in_specs,
            out_specs=pl.BlockSpec((bn, 1), lambda i, k: (i, 0)),
            scratch_shapes=[pltpu.VMEM((bn, td), jnp.float32),
                            pltpu.VMEM((bn, td), jnp.float32)],
        ),
        compiler_params=pltpu.CompilerParams(
            dimension_semantics=("parallel", "arbitrary"),
            vmem_limit_bytes=48 * 1024 * 1024,   # < 64 MiB physical on v7x
        ),
    )(*inputs)

    # Tiny (N, 1) mean in the wrapper (matches .mean() over rows).
    return jnp.mean(per_row)


def _reference(input_, targets, weights, weights_normalize=False):
    N = targets.shape[0]
    smooth = 1.0
    x = input_.reshape(N, -1).astype(jnp.float32)
    t = targets.reshape(N, -1).astype(jnp.float32)
    w = weights.reshape(N, -1).astype(jnp.float32)
    if weights_normalize:
        w = w / w.sum(0) * w.shape[0]
    inter = x * t
    dice = (2.0 * (inter * w).sum(1) + smooth) / (
        (x * w).sum(1) + (t * w).sum(1) + smooth + 1e-5)
    return (1.0 - dice).mean()


if __name__ == "__main__":
    key = jax.random.PRNGKey(0)
    k1, k2, k3 = jax.random.split(key, 3)

    # NCHW, small shapes: batch=2, channels=4, spatial=16x16
    shape = (2, 4, 16, 16)
    input_ = jax.nn.sigmoid(jax.random.normal(k1, shape, dtype=jnp.float32))
    targets = (jax.random.uniform(k2, shape) > 0.5).astype(jnp.float32)
    weights = jax.random.uniform(k3, shape, dtype=jnp.float32) + 0.1

    ok = True
    for norm in (False, True):
        loss = binary_dice_loss_weighted(input_, targets, weights,
                                         weights_normalize=norm)
        loss = jax.block_until_ready(loss)
        ref = _reference(input_, targets, weights, weights_normalize=norm)
        ok = ok and bool(jnp.allclose(loss, ref, rtol=1e-5, atol=1e-6))
        assert ok, (norm, loss, ref)

    print("KERNEL_OK")
</pallas_src>

<mosaic_0001>
module attributes {stable_mosaic.version = 11 : i64} {
  func.func @_dice_kernel(%arg0: i32, %arg1: i32, %arg2: memref<2x1024xf32, #tpu.memory_space<vmem>>, %arg3: memref<2x1024xf32, #tpu.memory_space<vmem>>, %arg4: memref<2x1024xf32, #tpu.memory_space<vmem>>, %arg5: memref<2x1xf32, #tpu.memory_space<vmem>>, %arg6: memref<2x1024xf32, #tpu.memory_space<vmem>>, %arg7: memref<2x1024xf32, #tpu.memory_space<vmem>>) attributes {dimension_semantics = [#tpu.dimension_semantics<parallel>, #tpu.dimension_semantics<arbitrary>], iteration_bounds = array<i64: 1, 1>, scalar_prefetch = 0 : i64, scratch_operands = 2 : i64, tpu.core_type = #tpu.core_type<tc>, window_params = [{transform_indices = @transform_0, window_bounds = array<i64: 2, 1024>}, {transform_indices = @transform_1, window_bounds = array<i64: 2, 1024>}, {transform_indices = @transform_2, window_bounds = array<i64: 2, 1024>}, {transform_indices = @transform_3, window_bounds = array<i64: 2, 1>}]} {
    %c0_i32 = arith.constant 0 : i32
    %0 = arith.cmpi eq, %arg1, %c0_i32 : i32
    %1 = arith.extui %0 : i1 to i32
    %c0_i32_0 = arith.constant 0 : i32
    %2 = arith.cmpi ne, %1, %c0_i32_0 : i32
    scf.if %2 {
      %cst = arith.constant 0.000000e+00 : f32
      %19 = vector.broadcast %cst : f32 to vector<2x1024xf32>
      %c0_16 = arith.constant 0 : index
      %c0_17 = arith.constant 0 : index
      %20 = vector.load %arg6[%c0_16, %c0_17] : memref<2x1024xf32, #tpu.memory_space<vmem>>, vector<2x1024xf32>
      tpu.vector_store %arg6[%c0_16, %c0_17], %19 {strides = array<i32>} : memref<2x1024xf32, #tpu.memory_space<vmem>>, vector<2x1024xf32>,
      %cst_18 = arith.constant 0.000000e+00 : f32
      %21 = vector.broadcast %cst_18 : f32 to vector<2x1024xf32>
      %c0_19 = arith.constant 0 : index
      %c0_20 = arith.constant 0 : index
      %22 = vector.load %arg7[%c0_19, %c0_20] : memref<2x1024xf32, #tpu.memory_space<vmem>>, vector<2x1024xf32>
      tpu.vector_store %arg7[%c0_19, %c0_20], %21 {strides = array<i32>} : memref<2x1024xf32, #tpu.memory_space<vmem>>, vector<2x1024xf32>,
    } else {
    }
    %c0 = arith.constant 0 : index
    %c0_1 = arith.constant 0 : index
    %3 = vector.load %arg2[%c0, %c0_1] : memref<2x1024xf32, #tpu.memory_space<vmem>>, vector<2x1024xf32>
    %c0_2 = arith.constant 0 : index
    %c0_3 = arith.constant 0 : index
    %4 = vector.load %arg3[%c0_2, %c0_3] : memref<2x1024xf32, #tpu.memory_space<vmem>>, vector<2x1024xf32>
    %c0_4 = arith.constant 0 : index
    %c0_5 = arith.constant 0 : index
    %5 = vector.load %arg4[%c0_4, %c0_5] : memref<2x1024xf32, #tpu.memory_space<vmem>>, vector<2x1024xf32>
    %6 = arith.mulf %3, %4 : vector<2x1024xf32>
    %7 = arith.mulf %6, %5 : vector<2x1024xf32>
    %8 = arith.addf %3, %4 : vector<2x1024xf32>
    %9 = arith.mulf %8, %5 : vector<2x1024xf32>
    %c0_6 = arith.constant 0 : index
    %c0_7 = arith.constant 0 : index
    %10 = vector.load %arg6[%c0_6, %c0_7] : memref<2x1024xf32, #tpu.memory_space<vmem>>, vector<2x1024xf32>
    %11 = arith.addf %10, %7 : vector<2x1024xf32>
    %c0_8 = arith.constant 0 : index
    %c0_9 = arith.constant 0 : index
    %12 = vector.load %arg6[%c0_8, %c0_9] : memref<2x1024xf32, #tpu.memory_space<vmem>>, vector<2x1024xf32>
    tpu.vector_store %arg6[%c0_8, %c0_9], %11 {strides = array<i32>} : memref<2x1024xf32, #tpu.memory_space<vmem>>, vector<2x1024xf32>,
    %c0_10 = arith.constant 0 : index
    %c0_11 = arith.constant 0 : index
    %13 = vector.load %arg7[%c0_10, %c0_11] : memref<2x1024xf32, #tpu.memory_space<vmem>>, vector<2x1024xf32>
    %14 = arith.addf %13, %9 : vector<2x1024xf32>
    %c0_12 = arith.constant 0 : index
    %c0_13 = arith.constant 0 : index
    %15 = vector.load %arg7[%c0_12, %c0_13] : memref<2x1024xf32, #tpu.memory_space<vmem>>, vector<2x1024xf32>
    tpu.vector_store %arg7[%c0_12, %c0_13], %14 {strides = array<i32>} : memref<2x1024xf32, #tpu.memory_space<vmem>>, vector<2x1024xf32>,
    %c0_i32_14 = arith.constant 0 : i32
    %16 = arith.cmpi eq, %arg1, %c0_i32_14 : i32
    %17 = arith.extui %16 : i1 to i32
    %c0_i32_15 = arith.constant 0 : i32
    %18 = arith.cmpi ne, %17, %c0_i32_15 : i32
    scf.if %18 {
      %c0_16 = arith.constant 0 : index
      %c0_17 = arith.constant 0 : index
      %19 = vector.load %arg6[%c0_16, %c0_17] : memref<2x1024xf32, #tpu.memory_space<vmem>>, vector<2x1024xf32>
      %cst = arith.constant dense<0.000000e+00> : vector<2xf32>
      %20 = vector.multi_reduction <add>, %19, %cst [1] : vector<2x1024xf32> to vector<2xf32>
      %21 = vector.shape_cast %20 : vector<2xf32> to vector<2x1xf32>
      %c0_18 = arith.constant 0 : index
      %c0_19 = arith.constant 0 : index
      %22 = vector.load %arg7[%c0_18, %c0_19] : memref<2x1024xf32, #tpu.memory_space<vmem>>, vector<2x1024xf32>
      %cst_20 = arith.constant dense<0.000000e+00> : vector<2xf32>
      %23 = vector.multi_reduction <add>, %22, %cst_20 [1] : vector<2x1024xf32> to vector<2xf32>
      %24 = vector.shape_cast %23 : vector<2xf32> to vector<2x1xf32>
      %cst_21 = arith.constant 2.000000e+00 : f32
      %25 = vector.broadcast %cst_21 : f32 to vector<2x1xf32>
      %26 = arith.mulf %25, %21 : vector<2x1xf32>
      %cst_22 = arith.constant 1.000000e+00 : f32
      %27 = vector.broadcast %cst_22 : f32 to vector<2x1xf32>
      %28 = arith.addf %26, %27 : vector<2x1xf32>
      %cst_23 = arith.constant 1.000000e+00 : f32
      %29 = vector.broadcast %cst_23 : f32 to vector<2x1xf32>
      %30 = arith.addf %24, %29 : vector<2x1xf32>
      %cst_24 = arith.constant 9.99999974E-6 : f32
      %31 = vector.broadcast %cst_24 : f32 to vector<2x1xf32>
      %32 = arith.addf %30, %31 : vector<2x1xf32>
      %33 = arith.divf %28, %32 : vector<2x1xf32>
      %cst_25 = arith.constant 1.000000e+00 : f32
      %34 = vector.broadcast %cst_25 : f32 to vector<2x1xf32>
      %35 = arith.subf %34, %33 : vector<2x1xf32>
      %c0_26 = arith.constant 0 : index
      %c0_27 = arith.constant 0 : index
      %36 = vector.load %arg5[%c0_26, %c0_27] : memref<2x1xf32, #tpu.memory_space<vmem>>, vector<2x1xf32>
      tpu.vector_store %arg5[%c0_26, %c0_27], %35 {strides = array<i32>} : memref<2x1xf32, #tpu.memory_space<vmem>>, vector<2x1xf32>,
    } else {
    }
    return
  }
  func.func @transform_0(%arg0: i32, %arg1: i32) -> (i32, i32) {
    %c0_i32 = arith.constant 0 : i32
    return %arg0, %arg1 : i32, i32
  }
  func.func @transform_1(%arg0: i32, %arg1: i32) -> (i32, i32) {
    %c0_i32 = arith.constant 0 : i32
    return %arg0, %arg1 : i32, i32
  }
  func.func @transform_2(%arg0: i32, %arg1: i32) -> (i32, i32) {
    %c0_i32 = arith.constant 0 : i32
    return %arg0, %arg1 : i32, i32
  }
  func.func @transform_3(%arg0: i32, %arg1: i32) -> (i32, i32) {
    %c0_i32 = arith.constant 0 : i32
    %c0_i32_0 = arith.constant 0 : i32
    return %arg0, %c0_i32 : i32, i32
  }
}

</mosaic_0001>

<bundles_post_ra>
// kernel: tpu_custom_call.1
= control target key start
LH: loop header
LB: loop body
LE: loop exit
PB: predicated region body
PF: predicated region fallthrough
CT: control target
= control target key end

     0   :  { %8 = vsyncpa [#allocation5], 0  ;;  %s350_s0 = inlined_call_operand.hbm [shape: f32[2,1024], index: 0, kind: input, shape index: {}]   ;;  %s351_s1 = inlined_call_operand.hbm [shape: f32[2,1024], index: 1, kind: input, shape index: {}]   ;;  %s352_s2 = inlined_call_operand.hbm [shape: f32[2,1024], index: 2, kind: input, shape index: {}]   ;;  %s353_s3 = inlined_call_operand.vmem [shape: f32[2,1], index: 3, kind: output, shape index: {}]  }
   0x1   :  { %9 = vsyncpa [#allocation7], 0  ;;  %s298_s12 = smov [#allocation6]   ;;  %s299_s14 = smov [#allocation4]  }
   0x2   :  { %s26_s13 = sshll.u32 %s298_s12, 4  ;;  %s16_s15 = sshll.u32 %s299_s14, 4  ;;  %s27_s13 = int_to_ptr.vmem [resolvable:$true] %s26_s13  ;;  %s17_s15 = int_to_ptr.vmem [resolvable:$true] %s16_s15 }
   0x3   :  { %s242_s16 = scalar_lea.vmem %s27_s13, 256  ;;  %p247_p1 = scmp.lt.s32.totalorder %s27_s13, %s27_s13 }
   0x4   :  { %p243_p0 = scmp.ne.s32.totalorder %s27_s13, %s242_s16  ;;  %p248_p2 = scmp.lt.s32.totalorder %s242_s16, %s242_s16 }
   0x6   :  { %p249_p3 = por %p248_p2, %p247_p1 }
   0x8   :  { %p250_p4 = pnand %p249_p3, %p243_p0 }
   0xa   :  { %253 = shalt.err (!%p250_p4)
}
   0xb   :  { %29 = dma.hbm_to_vmem [thread:$0]  %s351_s1, 256, %s27_s13, [#allocation7]  }
   0xc   :  { %s262_s19 = scalar_lea.vmem %s17_s15, 256  ;;  %p267_p6 = scmp.lt.s32.totalorder %s17_s15, %s17_s15 }
   0xd   :  { %p263_p5 = scmp.ne.s32.totalorder %s17_s15, %s262_s19  ;;  %p268_p7 = scmp.lt.s32.totalorder %s262_s19, %s262_s19 }
   0xf   :  { %p269_p8 = por %p268_p7, %p267_p6 }
  0x11   :  { %p270_p9 = pnand %p269_p8, %p263_p5 }
  0x13   :  { %273 = shalt.err (!%p270_p9)
}
  0x14   :  { %19 = dma.hbm_to_vmem [thread:$0]  %s350_s0, 256, %s17_s15, [#allocation5]  }
  0x15   :  { %s300_s22 = smov [#allocation8]  }
  0x16   :  { %s36_s23 = sshll.u32 %s300_s22, 4  ;;  %s37_s23 = int_to_ptr.vmem [resolvable:$true] %s36_s23 }
  0x17   :  { %s282_s24 = scalar_lea.vmem %s37_s23, 256  ;;  %p287_p11 = scmp.lt.s32.totalorder %s37_s23, %s37_s23 }
  0x18   :  { %p283_p10 = scmp.ne.s32.totalorder %s37_s23, %s282_s24  ;;  %p288_p12 = scmp.lt.s32.totalorder %s282_s24, %s282_s24 }
  0x1a   :  { %p289_p13 = por %p288_p12, %p287_p11 }
  0x1c   :  { %p290_p0 = pnand %p289_p13, %p283_p10 }
  0x1e   :  { %293 = shalt.err (!%p290_p0)
}
  0x1f   :  { %39 = dma.hbm_to_vmem [thread:$0]  %s352_s2, 256, %s37_s23, [#allocation7]  }
  0x20   :  { %294 = dma.done.wait [#allocation5], 256  }
  0x21   :  { %295 = vsyncadd [#allocation5], 4294967040 }
  0x22   :  { %296 = dma.done.wait [#allocation7], 512  }
  0x23   :  { %297 = vsyncadd [#allocation7], 4294966784  ;;  %v94_v0 = vlaneseq  ;;  %v301_v1 = vmov 1983009808   ;;  %v57_v5 = vld [vmem:[#allocation4] sm:$0xff]  ;;  %v58_v6 = vld [vmem:[#allocation4 + $0x8] sm:$0xff] }
  0x24   :  { %v92_v2 = vunpack.c.l.s4 %v301_v1  ;;  %v59_v7 = vld [vmem:[#allocation6] sm:$0xff]  ;;  %v60_v8 = vld [vmem:[#allocation6 + $0x8] sm:$0xff]  ;;  %v61_v9 = vld [vmem:[#allocation8] sm:$0xff]  ;;  %vm132_vm0 = vcmask 1041408   ;;  %vm220_vm1 = vcmask 1024  }
  0x25   :  { %v95_v4 = vshrl.u32 %v94_v0, 7  ;;  %v62_v10 = vld [vmem:[#allocation8 + $0x8] sm:$0xff]  ;;  %v67_v11 = vadd.f32 %v59_v7, %v57_v5  ;;  %v63_v13 = vmul.f32 %v59_v7, %v57_v5  ;;  %v68_v14 = vadd.f32 %v60_v8, %v58_v6 }
  0x26   :  { %v93_v3 = vunpack.c.0.s8 %v92_v2  ;;  %v64_v15 = vmul.f32 %v60_v8, %v58_v6 }
  0x27   :  { %v69_v16 = vmul.f32 %v67_v11, %v61_v9  ;;  %v65_v17 = vmul.f32 %v63_v13, %v61_v9  ;;  %v70_v18 = vmul.f32 %v68_v14, %v62_v10 }
  0x28   :  { %v96_v12 = vsub.s32 %v93_v3, %v95_v4  ;;  %v66_v25 = vmul.f32 %v64_v15, %v62_v10 }
  0x29   :  { %v154_v19 = vcombine.high %v69_v16, %v69_v16  ;;  %v90_v21 = vcombine.high %v65_v17, %v65_v17  ;;  %v171_v23 = vcombine.high %v70_v18, %v70_v18 }
  0x2a   :  { %v161_v20 = vrot.slane %v69_v16, %v96_v12  ;;  %v97_v22 = vrot.slane %v65_v17, %v96_v12  ;;  %v178_v24 = vrot.slane %v70_v18, %v96_v12  ;;  %v107_v36 = vcombine.high %v66_v25, %v66_v25 }
  0x2b   :  { %v168_v26 = vrot.slane %v154_v19, %v96_v12  ;;  %v104_v29 = vrot.slane %v90_v21, %v96_v12  ;;  %v114_v37 = vrot.slane %v66_v25, %v96_v12  ;;  %v185_v38 = vrot.slane %v171_v23, %v96_v12 }
  0x2c   :  { %v169_v27 = vcombine.high %v161_v20, %v161_v20  ;;  %v196_v28 = vsel %vm132_vm0, %v161_v20, 0.0  ;;  %v105_v30 = vcombine.high %v97_v22, %v97_v22  ;;  %v186_v39 = vcombine.high %v178_v24, %v178_v24 }
  0x2d   :  { %v170_v31 = vcombine.high %v168_v26, %v168_v26  ;;  %v199_v33 = vsel %vm132_vm0, %v168_v26, 0.0  ;;  %v106_v35 = vcombine.high %v104_v29, %v104_v29  ;;  %v133_v41 = vsel %vm132_vm0, %v97_v22, 0.0 }
  0x2e   :  { %v197_v32 = vsel %vm132_vm0, %v169_v27, 0.0  ;;  %v134_v43 = vsel %vm132_vm0, %v105_v30, 0.0  ;;  %v136_v44 = vsel %vm132_vm0, %v104_v29, 0.0  ;;  %v203_v45 = vsel %vm132_vm0, %v178_v24, 0.0 }
  0x2f   :  { %v198_v34 = vadd.f32 %v197_v32, %v196_v28  ;;  %v201_v40 = vsel %vm132_vm0, %v170_v31, 0.0  ;;  %v135_v46 = vadd.f32 %v134_v43, %v133_v41  ;;  %v121_v48 = vrot.slane %v107_v36, %v96_v12 }
  0x30   :  { %v122_v49 = vcombine.high %v114_v37, %v114_v37  ;;  %v138_v50 = vsel %vm132_vm0, %v106_v35, 0.0  ;;  %v187_v51 = vcombine.high %v185_v38, %v185_v38  ;;  %v205_v52 = vsel %vm132_vm0, %v186_v39, 0.0 }
  0x31   :  { %v200_v42 = vadd.f32 %v199_v33, %v198_v34  ;;  %v137_v53 = vadd.f32 %v136_v44, %v135_v46  ;;  %v140_v55 = vsel %vm132_vm0, %v114_v37, 0.0  ;;  %v207_v56 = vsel %vm132_vm0, %v185_v38, 0.0 }
  0x32   :  { %v123_v59 = vcombine.high %v121_v48, %v121_v48  ;;  %v142_v60 = vsel %vm132_vm0, %v122_v49, 0.0  ;;  %v209_v61 = vsel %vm132_vm0, %v187_v51, 0.0  ;;  %v144_v0 = vsel %vm132_vm0, %v121_v48, 0.0 }
  0x33   :  { %v202_v47 = vadd.f32 %v201_v40, %v200_v42  ;;  %v139_v57 = vadd.f32 %v138_v50, %v137_v53 }
  0x34   :  { %v146_v3 = vsel %vm132_vm0, %v123_v59, 0.0 }
  0x35   :  { %v204_v54 = vadd.f32 %v203_v45, %v202_v47  ;;  %v141_v62 = vadd.f32 %v140_v55, %v139_v57 }
  0x37   :  { %v206_v58 = vadd.f32 %v205_v52, %v204_v54  ;;  %v143_v1 = vadd.f32 %v142_v60, %v141_v62 }
  0x39   :  { %v208_v63 = vadd.f32 %v207_v56, %v206_v58  ;;  %v145_v4 = vadd.f32 %v144_v0, %v143_v1 }
  0x3b   :  { %v210_v2 = vadd.f32 %v209_v61, %v208_v63  ;;  %v147_v5 = vadd.f32 %v146_v3, %v145_v4 }
  0x3d   :  { %211 = vadd.xlane.f32.xlu0 %v210_v2 }
  0x41   :  { %148 = vadd.xlane.f32.xlu0 %v147_v5 }
  0xc6   :  { %v212_v6 = vpop.xlane.xlu0 %211 }
  0xc7   :  { %v215_v7 = vadd.f32 1.0, %v212_v6 }
  0xc9   :  { %v216_v8 = vadd.f32 1e-05, %v215_v7 }
  0xca   :  { %v149_v9 = vpop.xlane.xlu0 %148 }
  0xcb   :  { %232 = vrcp.f32 %v216_v8  ;;  %v213_v10 = vmul.f32 2.0, %v149_v9 }
  0xcd   :  { %v214_v11 = vadd.f32 1.0, %v213_v10 }
  0xd8   :  { %v233_v12 = vpop.eup %232 }
  0xd9   :  { %v218_v13 = vmul.f32 %v233_v12, %v214_v11 }
  0xdb   :  { %v219_v14 = vsub.f32 1.0, %v218_v13 }
  0xdd   :  { %221 = vst.msk [vmem:[%s353_s3] sm:$0x3] %vm220_vm1, %v219_v14 }
  0xde   :  { %226 = vsyncpa [#allocation5], 1 }
  0xdf   :  { %227 = vsyncpa [#allocation7], 1 }

</bundles_post_ra>
